<compile_context>
chip_gen: v6e
topology: v6e:2x2x1
jax: 0.10.0
libtpu: 0.0.40
codegen_flags: <defaults>
</compile_context>

<pallas_src>
import jax
import jax.numpy as jnp
from jax.experimental import pallas as pl
from jax.experimental.pallas import tpu as pltpu


def _round_up(n, m):
    return ((n + m - 1) // m) * m


def _triplet_mlp_kernel(x1_ref, x2_ref, x3_ref, w1_ref, b1_ref, w2_ref, b2_ref,
                        o1_ref, o2_ref, o3_ref):
    """Shared 2-layer MLP applied to one batch tile of each of the 3 inputs."""
    w1 = w1_ref[...]                      # (D_pad, H_pad)  bf16, VMEM-resident
    w2 = w2_ref[...]                      # (H_pad, E_pad)  bf16, VMEM-resident
    cdt = w1.dtype                        # MXU compute dtype (bf16)
    tm = x1_ref.shape[0]
    h_pad = w1.shape[1]
    e_pad = w2.shape[1]

    if tm <= 64:
        # --- small-batch path: stack the 3 tiles, one matmul per layer -------
        x = jnp.concatenate(
            [x1_ref[...], x2_ref[...], x3_ref[...]], axis=0).astype(cdt)
        b1 = jnp.broadcast_to(b1_ref[...], (3 * tm, h_pad))
        b2 = jnp.broadcast_to(b2_ref[...], (3 * tm, e_pad))
        h = jnp.dot(x, w1, preferred_element_type=jnp.float32) + b1
        h = jnp.maximum(h, 0.0)
        out = jnp.dot(h.astype(cdt), w2,
                      preferred_element_type=jnp.float32) + b2
        o1_ref[...] = out[:tm].astype(o1_ref.dtype)
        o2_ref[...] = out[tm:2 * tm].astype(o2_ref.dtype)
        o3_ref[...] = out[2 * tm:].astype(o3_ref.dtype)
    else:
        # --- large-batch path: three sequential embeds, hoisted bias bcast ---
        b1 = jnp.broadcast_to(b1_ref[...], (tm, h_pad))
        b2 = jnp.broadcast_to(b2_ref[...], (tm, e_pad))

        def embed(x_ref, o_ref):
            x = x_ref[...].astype(cdt)    # f32 -> bf16 cast in VMEM (hidden)
            h = jnp.dot(x, w1, preferred_element_type=jnp.float32) + b1
            h = jnp.maximum(h, 0.0)
            out = jnp.dot(h.astype(cdt), w2,
                          preferred_element_type=jnp.float32) + b2
            o_ref[...] = out.astype(o_ref.dtype)

        embed(x1_ref, o1_ref)
        embed(x2_ref, o2_ref)
        embed(x3_ref, o3_ref)


def triplet_net_forward(x1, x2, x3, padded_params, *, tm_max=512,
                        out_dtype=jnp.bfloat16):
    """TripletNet.forward: one shared embedding net applied to x1, x2, x3.

    Returns three (n, E_pad) arrays in `out_dtype`; columns >= emb_dim are
    exactly zero (lane-dense padded outputs, no post-kernel slice copy).
    """
    w1, b1, w2, b2 = padded_params
    d_pad, h_pad = w1.shape
    e_pad = w2.shape[1]

    def flat(x):
        xf = x.reshape(x.shape[0], -1)            # like view(B, -1); stays f32
        if xf.shape[1] != d_pad:                  # lane-dense K for the MXU
            xf = jnp.pad(xf, ((0, 0), (0, d_pad - xf.shape[1])))
        return xf

    x1f, x2f, x3f = flat(x1), flat(x2), flat(x3)
    n = x1f.shape[0]

    # Batch tile: >=2 grid steps whenever possible so v7x megacore gets work;
    # /8-aligned (f32 inputs). Tiny batches fall back to a single full block.
    if n <= 8:
        tm = n
    else:
        tm = min(tm_max, _round_up(pl.cdiv(n, 2), 8))
    grid = (pl.cdiv(n, tm),)

    x_spec = pl.BlockSpec((tm, d_pad), lambda m: (m, 0))
    o_spec = pl.BlockSpec((tm, e_pad), lambda m: (m, 0))

    def resident(shape):
        # Constant index_map -> fetched once, VMEM-resident across the grid.
        return pl.BlockSpec(shape, lambda m: (0, 0))

    out_sds = jax.ShapeDtypeStruct((n, e_pad), out_dtype)

    # --- right-sized scoped VMEM limit (cap 56 MiB; safe on v7x's 64 MiB) ---
    in_b = x1f.dtype.itemsize
    out_b = jnp.dtype(out_dtype).itemsize
    w_bytes = int(w1.size * w1.dtype.itemsize + b1.size * b1.dtype.itemsize +
                  w2.size * w2.dtype.itemsize + b2.size * b2.dtype.itemsize)
    io_bytes = 2 * 3 * tm * (d_pad * in_b + e_pad * out_b)     # double-buffered
    scratch_bytes = 2 * 3 * tm * (h_pad + e_pad) * 4           # f32 intermediates
    vmem_limit = int(min(56 * 1024 * 1024,
                         max(8 * 1024 * 1024,
                             2 * w_bytes + io_bytes + scratch_bytes + (4 << 20))))

    flops = 2 * 3 * n * (d_pad * h_pad + h_pad * e_pad)
    bytes_accessed = 3 * n * d_pad * in_b + 3 * n * e_pad * out_b + w_bytes
    cost = pl.CostEstimate(flops=flops, transcendentals=0,
                           bytes_accessed=bytes_accessed)

    o1, o2, o3 = pl.pallas_call(
        _triplet_mlp_kernel,
        out_shape=(out_sds, out_sds, out_sds),
        grid_spec=pltpu.PrefetchScalarGridSpec(
            num_scalar_prefetch=0,
            grid=grid,
            in_specs=[
                x_spec, x_spec, x_spec,
                resident((d_pad, h_pad)),
                resident((1, h_pad)),
                resident((h_pad, e_pad)),
                resident((1, e_pad)),
            ],
            out_specs=[o_spec, o_spec, o_spec],
        ),
        compiler_params=pltpu.CompilerParams(
            dimension_semantics=("parallel",),     # megacore shard on v7x
            vmem_limit_bytes=vmem_limit,
        ),
        cost_estimate=cost,
    )(x1f, x2f, x3f, w1, b1, w2, b2)

    return o1, o2, o3


def init_params(key, d_in, hidden, emb_dim):
    """PyTorch-Linear-like uniform init; logical (unpadded) f32 params."""
    k1, k2, k3, k4 = jax.random.split(key, 4)
    bound1 = 1.0 / jnp.sqrt(d_in)
    bound2 = 1.0 / jnp.sqrt(hidden)
    w1 = jax.random.uniform(k1, (d_in, hidden), jnp.float32, -bound1, bound1)
    b1 = jax.random.uniform(k2, (hidden,), jnp.float32, -bound1, bound1)
    w2 = jax.random.uniform(k3, (hidden, emb_dim), jnp.float32, -bound2, bound2)
    b2 = jax.random.uniform(k4, (emb_dim,), jnp.float32, -bound2, bound2)
    return w1, b1, w2, b2


def prepare_params(params, *, compute_dtype=jnp.bfloat16, lane=128):
    """One-time setup: zero-pad d_in/hidden/emb dims to lane multiples (exact)
    and cast the weight matrices to the MXU compute dtype (biases stay f32)."""
    w1, b1, w2, b2 = params
    d_in, hidden = w1.shape
    emb_dim = w2.shape[1]
    d_pad = _round_up(d_in, lane)
    h_pad = _round_up(hidden, lane)
    e_pad = _round_up(emb_dim, lane)

    w1p = jnp.zeros((d_pad, h_pad), compute_dtype).at[:d_in, :hidden].set(
        w1.astype(compute_dtype))
    b1p = jnp.zeros((1, h_pad), jnp.float32).at[:, :hidden].set(
        b1.reshape(1, -1).astype(jnp.float32))
    w2p = jnp.zeros((h_pad, e_pad), compute_dtype).at[:hidden, :emb_dim].set(
        w2.astype(compute_dtype))
    b2p = jnp.zeros((1, e_pad), jnp.float32).at[:, :emb_dim].set(
        b2.reshape(1, -1).astype(jnp.float32))
    return (w1p, b1p, w2p, b2p), emb_dim


if __name__ == "__main__":
    key = jax.random.PRNGKey(0)
    kp, kx1, kx2, kx3 = jax.random.split(key, 4)

    B, D_IN, HIDDEN, EMB = 2, 32, 64, 16
    raw_params = init_params(kp, D_IN, HIDDEN, EMB)
    padded_params, emb_dim = prepare_params(raw_params)

    x1 = jax.random.normal(kx1, (B, D_IN), jnp.float32)
    x2 = jax.random.normal(kx2, (B, D_IN), jnp.float32)
    x3 = jax.random.normal(kx3, (B, D_IN), jnp.float32)

    fwd = jax.jit(triplet_net_forward)
    o1, o2, o3 = fwd(x1, x2, x3, padded_params)
    jax.block_until_ready((o1, o2, o3))

    e_pad = padded_params[2].shape[1]
    assert o1.shape == (B, e_pad) and o2.shape == (B, e_pad) and o3.shape == (B, e_pad)

    # 1) Matched-numerics reference (bf16 matmul inputs, f32 acc, bf16 out) on
    #    the same padded shared params.
    def ref_embed_matched(x, pp, compute_dtype=jnp.bfloat16):
        w1, b1, w2, b2 = pp
        xf = x.reshape(x.shape[0], -1)
        xf = jnp.pad(xf, ((0, 0), (0, w1.shape[0] - xf.shape[1])))
        h = jnp.dot(xf.astype(compute_dtype), w1,
                    preferred_element_type=jnp.float32) + b1
        h = jnp.maximum(h, 0.0)
        out = jnp.dot(h.astype(compute_dtype), w2,
                      preferred_element_type=jnp.float32) + b2
        return out.astype(compute_dtype)

    # 2) Full-f32 reference on the raw (unpadded) params — PyTorch-fidelity.
    def ref_embed_f32(x, params):
        w1, b1, w2, b2 = params
        xf = x.reshape(x.shape[0], -1)
        h = jnp.maximum(xf @ w1 + b1, 0.0)
        return h @ w2 + b2

    for xi, oi in ((x1, o1), (x2, o2), (x3, o3)):
        rm = ref_embed_matched(xi, padded_params)
        rf = ref_embed_f32(xi, raw_params)
        oi_f32 = oi.astype(jnp.float32)
        # padded columns must be exactly zero
        assert bool(jnp.all(oi_f32[:, emb_dim:] == 0.0)), "padded cols nonzero"
        assert jnp.allclose(oi_f32, rm.astype(jnp.float32),
                            rtol=1e-2, atol=1e-2), "matched-numerics mismatch"
        assert jnp.allclose(oi_f32[:, :emb_dim], rf,
                            rtol=5e-2, atol=5e-2), "f32 reference mismatch"

    print("KERNEL_OK")
</pallas_src>

<mosaic_0001>
module attributes {stable_mosaic.version = 11 : i64} {
  func.func @_triplet_mlp_kernel(%arg0: i32, %arg1: memref<2x128xf32, #tpu.memory_space<vmem>>, %arg2: memref<2x128xf32, #tpu.memory_space<vmem>>, %arg3: memref<2x128xf32, #tpu.memory_space<vmem>>, %arg4: memref<128x128xbf16, #tpu.memory_space<vmem>>, %arg5: memref<1x128xf32, #tpu.memory_space<vmem>>, %arg6: memref<128x128xbf16, #tpu.memory_space<vmem>>, %arg7: memref<1x128xf32, #tpu.memory_space<vmem>>, %arg8: memref<2x128xbf16, #tpu.memory_space<vmem>>, %arg9: memref<2x128xbf16, #tpu.memory_space<vmem>>, %arg10: memref<2x128xbf16, #tpu.memory_space<vmem>>) attributes {dimension_semantics = [#tpu.dimension_semantics<parallel>], iteration_bounds = array<i64: 1>, scalar_prefetch = 0 : i64, scratch_operands = 0 : i64, tpu.core_type = #tpu.core_type<tc>, window_params = [{transform_indices = @transform_0, window_bounds = array<i64: 2, 128>}, {transform_indices = @transform_1, window_bounds = array<i64: 2, 128>}, {transform_indices = @transform_2, window_bounds = array<i64: 2, 128>}, {pipeline_mode = #tpu.pipeline_mode<synchronous>, transform_indices = @transform_3, window_bounds = array<i64: 128, 128>}, {pipeline_mode = #tpu.pipeline_mode<synchronous>, transform_indices = @transform_4, window_bounds = array<i64: 1, 128>}, {pipeline_mode = #tpu.pipeline_mode<synchronous>, transform_indices = @transform_5, window_bounds = array<i64: 128, 128>}, {pipeline_mode = #tpu.pipeline_mode<synchronous>, transform_indices = @transform_6, window_bounds = array<i64: 1, 128>}, {transform_indices = @transform_7, window_bounds = array<i64: 2, 128>}, {transform_indices = @transform_8, window_bounds = array<i64: 2, 128>}, {transform_indices = @transform_9, window_bounds = array<i64: 2, 128>}]} {
    %c0 = arith.constant 0 : index
    %c0_0 = arith.constant 0 : index
    %0 = vector.load %arg4[%c0, %c0_0] : memref<128x128xbf16, #tpu.memory_space<vmem>>, vector<128x128xbf16>
    %c0_1 = arith.constant 0 : index
    %c0_2 = arith.constant 0 : index
    %1 = vector.load %arg6[%c0_1, %c0_2] : memref<128x128xbf16, #tpu.memory_space<vmem>>, vector<128x128xbf16>
    %c0_3 = arith.constant 0 : index
    %c0_4 = arith.constant 0 : index
    %2 = vector.load %arg1[%c0_3, %c0_4] : memref<2x128xf32, #tpu.memory_space<vmem>>, vector<2x128xf32>
    %c0_5 = arith.constant 0 : index
    %c0_6 = arith.constant 0 : index
    %3 = vector.load %arg2[%c0_5, %c0_6] : memref<2x128xf32, #tpu.memory_space<vmem>>, vector<2x128xf32>
    %c0_7 = arith.constant 0 : index
    %c0_8 = arith.constant 0 : index
    %4 = vector.load %arg3[%c0_7, %c0_8] : memref<2x128xf32, #tpu.memory_space<vmem>>, vector<2x128xf32>
    %5 = tpu.concatenate %2, %3, %4 in 0 : vector<2x128xf32>, vector<2x128xf32>, vector<2x128xf32> -> vector<6x128xf32>
    %6 = arith.truncf %5 : vector<6x128xf32> to vector<6x128xbf16>
    %c0_9 = arith.constant 0 : index
    %c0_10 = arith.constant 0 : index
    %7 = vector.load %arg5[%c0_9, %c0_10] : memref<1x128xf32, #tpu.memory_space<vmem>>, vector<1x128xf32>
    %8 = vector.shape_cast %7 : vector<1x128xf32> to vector<1x128xf32>
    %9 = vector.broadcast %8 : vector<1x128xf32> to vector<6x128xf32>
    %c0_11 = arith.constant 0 : index
    %c0_12 = arith.constant 0 : index
    %10 = vector.load %arg7[%c0_11, %c0_12] : memref<1x128xf32, #tpu.memory_space<vmem>>, vector<1x128xf32>
    %11 = vector.shape_cast %10 : vector<1x128xf32> to vector<1x128xf32>
    %12 = vector.broadcast %11 : vector<1x128xf32> to vector<6x128xf32>
    %cst = arith.constant dense<0.000000e+00> : vector<6x128xf32>
    %13 = tpu.matmul %6, %0, %cst {dimension_numbers = #tpu.dot_dimension_numbers<[1], [0], [0], [1], [0, 0, 1, 1], [], []>} : vector<6x128xbf16>, vector<128x128xbf16>, vector<6x128xf32> -> vector<6x128xf32>
    %14 = arith.addf %13, %9 : vector<6x128xf32>
    %cst_13 = arith.constant 0.000000e+00 : f32
    %15 = vector.broadcast %cst_13 : f32 to vector<6x128xf32>
    %16 = arith.maximumf %14, %15 : vector<6x128xf32>
    %17 = arith.truncf %16 : vector<6x128xf32> to vector<6x128xbf16>
    %cst_14 = arith.constant dense<0.000000e+00> : vector<6x128xf32>
    %18 = tpu.matmul %17, %1, %cst_14 {dimension_numbers = #tpu.dot_dimension_numbers<[1], [0], [0], [1], [0, 0, 1, 1], [], []>} : vector<6x128xbf16>, vector<128x128xbf16>, vector<6x128xf32> -> vector<6x128xf32>
    %19 = arith.addf %18, %12 : vector<6x128xf32>
    %20 = vector.extract_strided_slice %19 {offsets = [0, 0], sizes = [2, 128], strides = [1, 1]} : vector<6x128xf32> to vector<2x128xf32>
    %21 = arith.truncf %20 : vector<2x128xf32> to vector<2x128xbf16>
    %c0_15 = arith.constant 0 : index
    %c0_16 = arith.constant 0 : index
    %22 = vector.load %arg8[%c0_15, %c0_16] : memref<2x128xbf16, #tpu.memory_space<vmem>>, vector<2x128xbf16>
    tpu.vector_store %arg8[%c0_15, %c0_16], %21 {strides = array<i32>} : memref<2x128xbf16, #tpu.memory_space<vmem>>, vector<2x128xbf16>,
    %23 = vector.extract_strided_slice %19 {offsets = [2, 0], sizes = [2, 128], strides = [1, 1]} : vector<6x128xf32> to vector<2x128xf32>
    %24 = arith.truncf %23 : vector<2x128xf32> to vector<2x128xbf16>
    %c0_17 = arith.constant 0 : index
    %c0_18 = arith.constant 0 : index
    %25 = vector.load %arg9[%c0_17, %c0_18] : memref<2x128xbf16, #tpu.memory_space<vmem>>, vector<2x128xbf16>
    tpu.vector_store %arg9[%c0_17, %c0_18], %24 {strides = array<i32>} : memref<2x128xbf16, #tpu.memory_space<vmem>>, vector<2x128xbf16>,
    %26 = vector.extract_strided_slice %19 {offsets = [4, 0], sizes = [2, 128], strides = [1, 1]} : vector<6x128xf32> to vector<2x128xf32>
    %27 = arith.truncf %26 : vector<2x128xf32> to vector<2x128xbf16>
    %c0_19 = arith.constant 0 : index
    %c0_20 = arith.constant 0 : index
    %28 = vector.load %arg10[%c0_19, %c0_20] : memref<2x128xbf16, #tpu.memory_space<vmem>>, vector<2x128xbf16>
    tpu.vector_store %arg10[%c0_19, %c0_20], %27 {strides = array<i32>} : memref<2x128xbf16, #tpu.memory_space<vmem>>, vector<2x128xbf16>,
    return
  }
  func.func @transform_0(%arg0: i32) -> (i32, i32) {
    %c0_i32 = arith.constant 0 : i32
    %c0_i32_0 = arith.constant 0 : i32
    return %arg0, %c0_i32 : i32, i32
  }
  func.func @transform_1(%arg0: i32) -> (i32, i32) {
    %c0_i32 = arith.constant 0 : i32
    %c0_i32_0 = arith.constant 0 : i32
    return %arg0, %c0_i32 : i32, i32
  }
  func.func @transform_2(%arg0: i32) -> (i32, i32) {
    %c0_i32 = arith.constant 0 : i32
    %c0_i32_0 = arith.constant 0 : i32
    return %arg0, %c0_i32 : i32, i32
  }
  func.func @transform_3(%arg0: i32) -> (i32, i32) {
    %c0_i32 = arith.constant 0 : i32
    %c0_i32_0 = arith.constant 0 : i32
    %c0_i32_1 = arith.constant 0 : i32
    return %c0_i32, %c0_i32_0 : i32, i32
  }
  func.func @transform_4(%arg0: i32) -> (i32, i32) {
    %c0_i32 = arith.constant 0 : i32
    %c0_i32_0 = arith.constant 0 : i32
    %c0_i32_1 = arith.constant 0 : i32
    return %c0_i32, %c0_i32_0 : i32, i32
  }
  func.func @transform_5(%arg0: i32) -> (i32, i32) {
    %c0_i32 = arith.constant 0 : i32
    %c0_i32_0 = arith.constant 0 : i32
    %c0_i32_1 = arith.constant 0 : i32
    return %c0_i32, %c0_i32_0 : i32, i32
  }
  func.func @transform_6(%arg0: i32) -> (i32, i32) {
    %c0_i32 = arith.constant 0 : i32
    %c0_i32_0 = arith.constant 0 : i32
    %c0_i32_1 = arith.constant 0 : i32
    return %c0_i32, %c0_i32_0 : i32, i32
  }
  func.func @transform_7(%arg0: i32) -> (i32, i32) {
    %c0_i32 = arith.constant 0 : i32
    %c0_i32_0 = arith.constant 0 : i32
    return %arg0, %c0_i32 : i32, i32
  }
  func.func @transform_8(%arg0: i32) -> (i32, i32) {
    %c0_i32 = arith.constant 0 : i32
    %c0_i32_0 = arith.constant 0 : i32
    return %arg0, %c0_i32 : i32, i32
  }
  func.func @transform_9(%arg0: i32) -> (i32, i32) {
    %c0_i32 = arith.constant 0 : i32
    %c0_i32_0 = arith.constant 0 : i32
    return %arg0, %c0_i32 : i32, i32
  }
}

</mosaic_0001>

<bundles_post_ra>
// kernel: triplet_net_forward.1
= control target key start
LH: loop header
LB: loop body
LE: loop exit
PB: predicated region body
PF: predicated region fallthrough
CT: control target
= control target key end

     0   :  { %15 = vsyncpa [#allocation3], 0  ;;  %s672_s0 = inlined_call_operand.vmem [shape: f32[2,128], index: 0, kind: input, shape index: {}]   ;;  %s673_s1 = inlined_call_operand.vmem [shape: f32[2,128], index: 1, kind: input, shape index: {}]   ;;  %s674_s2 = inlined_call_operand.vmem [shape: f32[2,128], index: 2, kind: input, shape index: {}]   ;;  %s675_s3 = inlined_call_operand.hbm [shape: bf16[128,128], index: 3, kind: input, shape index: {}]   ;;  %s676_s4 = inlined_call_operand.vmem [shape: f32[1,128], index: 4, kind: input, shape index: {}]   ;;  %s677_s5 = inlined_call_operand.hbm [shape: bf16[128,128], index: 5, kind: input, shape index: {}]   ;;  %s678_s6 = inlined_call_operand.vmem [shape: f32[1,128], index: 6, kind: input, shape index: {}]   ;;  %s679_s7 = inlined_call_operand.hbm [shape: bf16[2,128], index: 7, kind: output, shape index: {0}]   ;;  %s680_s8 = inlined_call_operand.hbm [shape: bf16[2,128], index: 8, kind: output, shape index: {1}]   ;;  %s681_s9 = inlined_call_operand.hbm [shape: bf16[2,128], index: 9, kind: output, shape index: {2}]  }
   0x1   :  { %16 = vsyncpa [#allocation6], 0 }
   0x2   :  { %17 = vsyncpa [#allocation4], 0 }
   0x3   :  { %18 = vsyncpa [#allocation9], 0  ;;  %s582_s30 = smov [#allocation2]  }
   0x4   :  { %s30_s10 = sshll.u32 %s582_s30, 4  ;;  %s31_s10 = int_to_ptr.vmem [resolvable:$true] %s30_s10 }
   0x5   :  { %s482_s11 = scalar_lea.vmem %s31_s10, 1024  ;;  %p487_p1 = scmp.lt.s32.totalorder %s31_s10, %s31_s10 }
   0x6   :  { %p483_p0 = scmp.ne.s32.totalorder %s31_s10, %s482_s11  ;;  %p488_p2 = scmp.lt.s32.totalorder %s482_s11, %s482_s11 }
   0x8   :  { %p489_p3 = por %p488_p2, %p487_p1 }
   0xa   :  { %p490_p4 = pnand %p489_p3, %p483_p0 }
   0xc   :  { %493 = shalt.err (!%p490_p4)
}
   0xd   :  { %s583_s12 = smov 64   ;;  %s584_s13 = smov 4  }
   0xe   :  { %36 = dma.hbm_to_vmem [thread:$0]  %s675_s3, 1024, %s31_s10, [#allocation3], %s583_s12, %s583_s12, %s584_s13  }
   0xf   :  { %s585_s16 = smov [#allocation5]  }
  0x10   :  { %s44_s17 = sshll.u32 %s585_s16, 4  ;;  %s45_s17 = int_to_ptr.vmem [resolvable:$true] %s44_s17 }
  0x11   :  { %s502_s18 = scalar_lea.vmem %s45_s17, 1024  ;;  %p507_p6 = scmp.lt.s32.totalorder %s45_s17, %s45_s17 }
  0x12   :  { %p503_p5 = scmp.ne.s32.totalorder %s45_s17, %s502_s18  ;;  %p508_p7 = scmp.lt.s32.totalorder %s502_s18, %s502_s18 }
  0x14   :  { %p509_p8 = por %p508_p7, %p507_p6 }
  0x16   :  { %p510_p9 = pnand %p509_p8, %p503_p5 }
  0x18   :  { %513 = shalt.err (!%p510_p9)
}
  0x19   :  { %50 = dma.hbm_to_vmem [thread:$0]  %s677_s5, 1024, %s45_s17, [#allocation6], %s583_s12, %s583_s12, %s584_s13  }
  0x1a   :  { %574 = dma.done.wait [#allocation3], 1024  }
  0x1b   :  { %575 = vsyncadd [#allocation3], 4294966272 }
  0x1c   :  { %576 = dma.done.wait [#allocation6], 1024  }
  0x1d   :  { %577 = vsyncadd [#allocation6], 4294966272  ;;  %v586_v0 = vmov 0.0   ;;  %vm587_vm0 = vmmov 0   ;;  %v458_v1 = vld [vmem:[#allocation2 + $0x38] sm:$0xff]   ;;  %v459_v2 = vld [vmem:[#allocation2 + $0x30] sm:$0xff]   ;;  %v304_v35 = vlaneseq }
  0x1e   :  { %408 = vmatprep.subr.bf16.mxu0 %v586_v0  ;;  %424 = vmatprep.mubr.msk.bf16.mxu0 %vm587_vm0, %v586_v0  ;;  %v460_v3 = vld [vmem:[#allocation2 + $0x28] sm:$0xff]   ;;  %v461_v4 = vld [vmem:[#allocation2 + $0x20] sm:$0xff]   ;;  %v466_v5 = vld [vmem:[#allocation5 + $0x38] sm:$0xff]   ;;  %vm101_vm1 = vcmask 1041408   ;;  %vm103_vm2 = vcmask 1043456   ;;  %s589_s26 = smov [#allocation7]  }
  0x1f   :  { %428 = vmatprep.subr.bf16.mxu1 %v586_v0  ;;  %444 = vmatprep.mubr.msk.bf16.mxu1 %vm587_vm0, %v586_v0  ;;  %v467_v6 = vld [vmem:[#allocation5 + $0x30] sm:$0xff]   ;;  %v462_v7 = vld [vmem:[#allocation2 + $0x18] sm:$0xff]   ;;  %v93_v8 = vld [vmem:[%s673_s1] sm:$0x3]  ;;  %v588_v33 = vmov 1966171168  }
  0x20   :  { %409 = vmatpush3.bf16.msra.mxu0 %v458_v1  ;;  %429 = vmatpush3.bf16.msra.mxu1 %v466_v5  ;;  %v468_v9 = vld [vmem:[#allocation5 + $0x28] sm:$0xff]   ;;  %v463_v10 = vld [vmem:[#allocation2 + $0x10] sm:$0xff]   ;;  %v94_v11 = vld [vmem:[%s674_s2] sm:$0x3]  ;;  %v96_v12 = vrot.slane %v93_v8, 6  ;;  %v302_v34 = vunpack.c.l.s4 %v588_v33  ;;  %v305_v37 = vshrl.u32 %v304_v35, 7 }
  0x21   :  { %410 = vmatprep.subr.bf16.mxu0 %v586_v0  ;;  %430 = vmatprep.subr.bf16.mxu1 %v586_v0  ;;  %v92_v13 = vld [vmem:[%s672_s0] sm:$0x3]  ;;  %v464_v15 = vld [vmem:[#allocation2 + $0x8] sm:$0xff]   ;;  %v99_v16 = vrot.slane %v94_v11, 4  ;;  %v470_v18 = vld [vmem:[#allocation5 + $0x18] sm:$0xff]   ;;  %s590_s27 = smov [#allocation8]  }
  0x22   :  { %v469_v14 = vld [vmem:[#allocation5 + $0x20] sm:$0xff]   ;;  %v102_v17 = vsel %vm101_vm1, %v92_v13, %v96_v12  ;;  %v471_v21 = vld [vmem:[#allocation5 + $0x10] sm:$0xff]   ;;  %v472_v23 = vld [vmem:[#allocation5 + $0x8] sm:$0xff]   ;;  %v303_v36 = vunpack.c.0.s8 %v302_v34  ;;  %s344_s28 = sshll.u32 %s590_s27, 4  ;;  %s591_s29 = smov [#allocation10]   ;;  %s345_s28 = int_to_ptr.vmem [resolvable:$true] %s344_s28 }
  0x23   :  { %v465_v19 = vld [vmem:[#allocation2] sm:$0xff]   ;;  %v104_v20 = vsel %vm103_vm2, %v102_v17, %v99_v16  ;;  %s354_s30 = sshll.u32 %s591_s29, 4  ;;  %s355_s30 = int_to_ptr.vmem [resolvable:$true] %s354_s30 }
  0x24   :  { %411 = vmatpush3.bf16.msra.mxu0 %v459_v2  ;;  %431 = vmatpush3.bf16.msra.mxu1 %v467_v6  ;;  %v105_v22 = vpack.c.bf16 %v104_v20, %v104_v20  ;;  %v473_v24 = vld [vmem:[#allocation5] sm:$0xff]   ;;  %v306_v41 = vsub.s32 %v303_v36, %v305_v37 }
  0x25   :  { %412 = vmatprep.subr.bf16.mxu0 %v586_v0  ;;  %432 = vmatprep.subr.bf16.mxu1 %v586_v0  ;;  %v371_v25 = vld [vmem:[%s676_s4] ss:$0 sm:$0xff]  ;;  %s334_s4 = sshll.u32 %s589_s26, 4  ;;  %s335_s4 = int_to_ptr.vmem [resolvable:$true] %s334_s4 }
  0x26   :  { %v372_v38 = vld [vmem:[%s678_s6] ss:$0 sm:$0xff]  ;;  %s514_s10 = scalar_lea.vmem %s335_s4, 16  ;;  %s518_s11 = scalar_lea.vmem %s335_s4, 32 }
  0x27   :  { %p515_p10 = scmp.ne.s32.totalorder %s335_s4, %s514_s10  ;;  %p519_p11 = scmp.lt.s32.totalorder %s335_s4, %s335_s4 }
  0x28   :  { %413 = vmatpush3.bf16.msra.mxu0 %v460_v3  ;;  %433 = vmatpush3.bf16.msra.mxu1 %v468_v9  ;;  %p520_p12 = scmp.lt.s32.totalorder %s518_s11, %s514_s10 }
  0x29   :  { %414 = vmatprep.subr.bf16.mxu0 %v586_v0  ;;  %434 = vmatprep.subr.bf16.mxu1 %v586_v0 }
  0x2a   :  { %p521_p13 = por %p520_p12, %p519_p11 }
  0x2c   :  { %415 = vmatpush3.bf16.msra.mxu0 %v461_v4  ;;  %435 = vmatpush3.bf16.msra.mxu1 %v469_v14  ;;  %p522_p0 = pnand %p521_p13, %p515_p10 }
  0x2d   :  { %416 = vmatprep.subr.bf16.mxu0 %v586_v0  ;;  %436 = vmatprep.subr.bf16.mxu1 %v586_v0 }
  0x30   :  { %417 = vmatpush3.bf16.msra.mxu0 %v462_v7  ;;  %437 = vmatpush3.bf16.msra.mxu1 %v470_v18 }
  0x31   :  { %418 = vmatprep.subr.bf16.mxu0 %v586_v0  ;;  %438 = vmatprep.subr.bf16.mxu1 %v586_v0 }
  0x34   :  { %419 = vmatpush3.bf16.msra.mxu0 %v463_v10  ;;  %439 = vmatpush3.bf16.msra.mxu1 %v471_v21 }
  0x35   :  { %420 = vmatprep.subr.bf16.mxu0 %v586_v0  ;;  %440 = vmatprep.subr.bf16.mxu1 %v586_v0 }
  0x38   :  { %421 = vmatpush3.bf16.msra.mxu0 %v464_v15  ;;  %441 = vmatpush3.bf16.msra.mxu1 %v472_v23 }
  0x39   :  { %422 = vmatprep.subr.bf16.mxu0 %v586_v0  ;;  %442 = vmatprep.subr.bf16.mxu1 %v586_v0 }
  0x3c   :  { %423 = vmatpush3.bf16.msra.mxu0 %v465_v19  ;;  %443 = vmatpush3.bf16.msra.mxu1 %v473_v24 }
  0x3f   :  { %425 = vmatmul.mubr.bf16.vlgmr.msra.gmra.mxu0 %v105_v22 }
  0xff   :  { %v202_v26 = vpop.f32.mrf.mxu0 }
 0x100   :  { %v203_v27 = vadd.f32 %v371_v25, %v202_v26 }
 0x101   :  { %v426_v28 = vpop.f32.mrf.mxu0 }
 0x102   :  { %v208_v29 = vmax.f32 %v203_v27, 0.0 }
 0x103   :  { %v205_v30 = vpop.f32.mrf.mxu0 }
 0x104   :  { %v209_v31 = vpack.c.bf16 %v208_v29, %v208_v29 }
 0x105   :  { %v427_v32 = vpop.f32.mrf.mxu0 }
 0x106   :  { %445 = vmatmul.mubr.bf16.vlgmr.msra.gmra.mxu1 %v209_v31 }
 0x1c6   :  { %v292_v39 = vpop.f32.mrf.mxu1 }
 0x1c7   :  { %v293_v40 = vadd.f32 %v372_v38, %v292_v39 }
 0x1c8   :  { %v446_v42 = vpop.f32.mrf.mxu1 }
 0x1c9   :  { %v298_v43 = vpack.c.bf16 %v293_v40, %v293_v40 }
 0x1ca   :  { %v295_v44 = vpop.f32.mrf.mxu1 }
 0x1cb   :  { %v307_v45 = vrot.slane %v298_v43, %v306_v41  ;;  %299 = vst [vmem:[#allocation7] sm:$0x1] %v298_v43 }
 0x1cc   :  { %v447_v46 = vpop.f32.mrf.mxu1 }
 0x1cd   :  { %525 = shalt.err (!%p522_p0)
}
 0x1ce   :  { %337 = dma.vmem_to_hbm [thread:$0]  %s335_s4, 16, %s679_s7, [#allocation4]   ;;  %v315_v47 = vrot.slane %v307_v45, %v306_v41  ;;  %v308_v48 = vcombine.high %v307_v45, %v307_v45 }
 0x1cf   :  { %s534_s13 = scalar_lea.vmem %s345_s28, 16  ;;  %s538_s14 = scalar_lea.vmem %s345_s28, 32 }
 0x1d0   :  { %389 = vst.sshfl [vmem:[#allocation8] sm:$0x1 pattern:$0x73625140] %v308_v48  ;;  %v325_v49 = vcombine.high %v315_v47, %v315_v47  ;;  %p535_p1 = scmp.ne.s32.totalorder %s345_s28, %s534_s13  ;;  %p539_p2 = scmp.lt.s32.totalorder %s345_s28, %s345_s28 }
 0x1d1   :  { %p540_p3 = scmp.lt.s32.totalorder %s538_s14, %s534_s13 }
 0x1d3   :  { %p541_p4 = por %p540_p3, %p539_p2 }
 0x1d5   :  { %p542_p5 = pnand %p541_p4, %p535_p1 }
 0x1d7   :  { %545 = shalt.err (!%p542_p5)
}
 0x1d8   :  { %347 = dma.vmem_to_hbm [thread:$0]  %s345_s28, 16, %s680_s8, [#allocation9]   ;;  %327 = vst [vmem:[#allocation10] sm:$0x1] %v325_v49 }
 0x1d9   :  { %s554_s7 = scalar_lea.vmem %s355_s30, 16  ;;  %s558_s17 = scalar_lea.vmem %s355_s30, 32 }
 0x1da   :  { %p555_p6 = scmp.ne.s32.totalorder %s355_s30, %s554_s7  ;;  %p559_p7 = scmp.lt.s32.totalorder %s355_s30, %s355_s30 }
 0x1db   :  { %p560_p8 = scmp.lt.s32.totalorder %s558_s17, %s554_s7 }
 0x1dd   :  { %p561_p9 = por %p560_p8, %p559_p7 }
 0x1df   :  { %p562_p10 = pnand %p561_p9, %p555_p6 }
 0x1e1   :  { %565 = shalt.err (!%p562_p10)
}
 0x1e2   :  { %357 = dma.vmem_to_hbm [thread:$0]  %s355_s30, 16, %s681_s9, [#allocation9]  }
 0x1e3   :  { %578 = dma.done.wait [#allocation4], 16  }
 0x1e4   :  { %579 = vsyncadd [#allocation4], 4294967280 }
 0x1e5   :  { %580 = dma.done.wait [#allocation9], 32  }
 0x1e6   :  { %581 = vsyncadd [#allocation9], 4294967264 }
 0x1e7   :  { %367 = vsyncpa [#allocation3], 1 }
 0x1e8   :  { %368 = vsyncpa [#allocation6], 1 }
 0x1e9   :  { %369 = vsyncpa [#allocation4], 1 }
 0x1ea   :  { %370 = vsyncpa [#allocation9], 1 }

</bundles_post_ra>
